<compile_context>
chip_gen: v7x
topology: tpu7x:2x2x1
jax: 0.10.0
libtpu: 0.0.40
codegen_flags: <defaults>
</compile_context>

<pallas_src>
import numpy as np
import jax
import jax.numpy as jnp
from jax.experimental import pallas as pl
from jax.experimental.pallas import tpu as pltpu

EPS = 1e-7
_LANE = 128
_SUBLANE = 8
# Exact reciprocal by default (keeps the 1e-6 sanity check tight).  Setting
# True moves the divide to the EUP slot (~2^-12 relative error) — worthwhile
# on v7x where the HBM/VALU slack is tighter.
_APPROX_RCP = False


def _round_up(x, n):
    return ((x + n - 1) // n) * n


# ---------------------------------------------------------------------------
# Pallas kernel: -clamp(softmax(x, axis=channel)[channel=1], eps, 1-eps)
# Block shapes: x_ref (tm, C, tl), o_ref (tm, tl).  Channel dim is the full C
# so the BlockSpec trivially satisfies the (8,128) tiling rule.
# ---------------------------------------------------------------------------
def _neg_clamped_prob1_kernel(x_ref, o_ref):
    x = x_ref[...].astype(jnp.float32)                 # f32 math even for bf16 input
    if x.shape[1] == 2:
        # 2-class softmax channel 1 == sigmoid(x1 - x0): no sublane reduce.
        d = x[:, 1, :] - x[:, 0, :]
        p1 = pl.reciprocal(1.0 + jnp.exp(-d), approx=_APPROX_RCP)
    else:
        xm = jnp.max(x, axis=1, keepdims=True)
        e = jnp.exp(x - xm)
        p1 = e[:, 1, :] * pl.reciprocal(jnp.sum(e, axis=1), approx=_APPROX_RCP)
    # Output stays f32; an optional bf16 store would halve write traffic but
    # perturbs the host-side f64 filtration values, so it is not enabled.
    o_ref[...] = (-jnp.clip(p1, EPS, 1.0 - EPS)).astype(o_ref.dtype)


# ---------------------------------------------------------------------------
# Generation-aware VMEM budgeting (sublane-pad aware)
# ---------------------------------------------------------------------------
def _vmem_caps():
    cap = 64 * 1024 * 1024                       # conservative fallback (v7x per-core)
    try:
        cap = int(pltpu.get_tpu_info().vmem_capacity_bytes)
    except Exception:
        pass
    budget = min(cap // 4, 32 * 1024 * 1024)     # double-buffered working-set target
    limit = min(cap // 2, 64 * 1024 * 1024)      # scoped-VMEM limit handed to Mosaic
    return budget, limit


def _choose_tiles(m, c, hw, in_itemsize, budget):
    """Pick (tm, tl, grid_m, grid_l) so 2x-buffered blocks fit the budget."""
    tm = m if m <= _SUBLANE else _SUBLANE
    # Second-to-last block dims pad to 8 sublanes for 32-bit, 16 for 16-bit, ...
    pack = max(1, 4 // max(in_itemsize, 1))
    c_pad = _round_up(c, _SUBLANE * pack)
    per_lane = 2 * (tm * c_pad * in_itemsize            # input block (double-buffered)
                    + _round_up(tm, _SUBLANE) * 4)       # f32 output block (double-buffered)
    hwp = _round_up(hw, _LANE)
    tl = max(_LANE, (budget // per_lane) // _LANE * _LANE)
    tl = min(tl, hwp)
    grid_m = pl.cdiv(m, tm)
    # v7x megacore: guarantee >= 2 grid steps on the parallel axes when the
    # lane extent allows a split (no effect on single-TC v5e/v6e).
    if grid_m * pl.cdiv(hwp, tl) < 2 and hwp > _LANE:
        tl = max(_LANE, _round_up(pl.cdiv(hwp, 2), _LANE))
    grid_l = pl.cdiv(hwp, tl)
    return tm, tl, grid_m, grid_l


# ---------------------------------------------------------------------------
# Device entry point: returns the padded (grid_m*tm, grid_l*tl) slab.
# Host consumers slice [:m, :H*W] (free NumPy views).
# ---------------------------------------------------------------------------
def neg_clamped_prob1_padded(beta, m):
    N, C, H, W = beta.shape
    assert C >= 2, "TopLoss consumes softmax channel 1"
    HW = H * W
    beta3 = beta.reshape(N, C, HW)               # free view: merge contiguous H, W
    budget, vmem_limit = _vmem_caps()
    tm, tl, grid_m, grid_l = _choose_tiles(m, C, HW, beta.dtype.itemsize, budget)

    return pl.pallas_call(
        _neg_clamped_prob1_kernel,
        out_shape=jax.ShapeDtypeStruct((grid_m * tm, grid_l * tl), jnp.float32),
        grid=(grid_m, grid_l),
        in_specs=[pl.BlockSpec((tm, C, tl), lambda i, j: (i, 0, j))],
        out_specs=pl.BlockSpec((tm, tl), lambda i, j: (i, j)),
        compiler_params=pltpu.CompilerParams(
            dimension_semantics=("parallel", "parallel"),
            vmem_limit_bytes=vmem_limit),
    )(beta3)


def neg_clamped_prob1_host(beta, m):
    """-clamp(softmax(beta,1)[:m,1], eps, 1-eps) as a NumPy (m, H, W) array."""
    _, _, H, W = beta.shape
    out = np.asarray(jax.device_get(neg_clamped_prob1_padded(beta, m)))
    return out[:m, :H * W].reshape(m, H, W)


# ---------------------------------------------------------------------------
# Host-side persistent homology (LevelSetLayer2D + barcode length sums)
# ---------------------------------------------------------------------------
def _freudenthal_filtration(g):
    """Lower-star filtration of the Freudenthal triangulation of an HxW grid.

    g is the (already negated) image, so this sublevel filtration has the same
    finite bar lengths as the superlevel filtration of the original image.
    Returns (values, dims, boundaries) with global simplex indexing.
    """
    H, W = g.shape
    values, dims, bnds = [], [], []
    vid = lambda i, j: i * W + j
    for i in range(H):
        for j in range(W):
            values.append(float(g[i, j])); dims.append(0); bnds.append(())
    edge_id = {}

    def add_edge(a, b):
        key = (min(a, b), max(a, b))
        edge_id[key] = len(values)
        values.append(max(values[a], values[b])); dims.append(1); bnds.append((a, b))

    def add_tri(a, b, c):
        e0 = edge_id[(min(a, b), max(a, b))]
        e1 = edge_id[(min(a, c), max(a, c))]
        e2 = edge_id[(min(b, c), max(b, c))]
        values.append(max(values[a], values[b], values[c]))
        dims.append(2); bnds.append((e0, e1, e2))

    for i in range(H):
        for j in range(W):
            a = vid(i, j)
            if j + 1 < W:
                add_edge(a, vid(i, j + 1))
            if i + 1 < H:
                add_edge(a, vid(i + 1, j))
            if i + 1 < H and j + 1 < W:
                add_edge(a, vid(i + 1, j + 1))          # Freudenthal diagonal
    for i in range(H - 1):
        for j in range(W - 1):
            a, r = vid(i, j), vid(i, j + 1)
            d, dd = vid(i + 1, j), vid(i + 1, j + 1)
            add_tri(a, r, dd)
            add_tri(a, d, dd)
    return np.asarray(values, dtype=np.float64), np.asarray(dims, dtype=np.int64), bnds


def _finite_barcode_sums(values, dims, bnds):
    """Standard Z/2 boundary-matrix reduction; returns (sum H0, sum H1) of
    finite bar lengths (infinite/essential bars contribute 0, matching
    topologylayer's get_barcode_lengths)."""
    order = np.lexsort((dims, values))           # by value, then dimension
    n = len(order)
    pos = np.empty(n, dtype=np.int64)
    pos[order] = np.arange(n)
    low_inv, cols = {}, {}
    sums = np.zeros(3, dtype=np.float64)
    for p in range(n):
        s = int(order[p])
        col = {int(pos[b]) for b in bnds[s]}
        while col:
            low = max(col)
            prev = low_inv.get(low)
            if prev is None:
                break
            col ^= cols[prev]
        if col:
            low = max(col)
            low_inv[low] = p
            cols[p] = col
            birth_s = int(order[low])
            sums[dims[birth_s]] += values[s] - values[birth_s]
    return sums[0], sums[1]


# ---------------------------------------------------------------------------
# TopLoss forward
# ---------------------------------------------------------------------------
def top_loss(beta):
    N, _, H, W = beta.shape
    M = N // 10
    g_all = neg_clamped_prob1_host(beta, M).astype(np.float64)   # Pallas kernel
    total = 0.0
    for i in range(M):
        values, dims, bnds = _freudenthal_filtration(g_all[i])
        s0, s1 = _finite_barcode_sums(values, dims, bnds)
        # PartialSumBarcodeLengths(dim=1, skip=0) + SumBarcodeLengths(dim=0)
        total += s1 + s0
    return total / M


if __name__ == "__main__":
    key = jax.random.PRNGKey(0)
    N, C, H, W = 20, 2, 16, 16                   # DeepVess: 2-class softmax maps
    beta = jax.random.normal(key, (N, C, H, W), dtype=jnp.float32)
    M = N // 10

    # run the Pallas kernel once and block on it
    out = neg_clamped_prob1_padded(beta, M)
    jax.block_until_ready(out)

    # sanity check: kernel == -clamp(softmax(beta, dim=1)[:M, 1], eps, 1-eps)
    ref = -jnp.clip(jax.nn.softmax(beta, axis=1)[:M, 1], EPS, 1.0 - EPS)
    got = np.asarray(jax.device_get(out))[:M, :H * W].reshape(M, H, W)
    assert np.allclose(got, np.asarray(jax.device_get(ref)), atol=1e-6, rtol=1e-5)

    loss = top_loss(beta)
    assert np.isfinite(loss)
    print("KERNEL_OK")
</pallas_src>

<mosaic_0001>
module attributes {stable_mosaic.version = 11 : i64} {
  func.func @_neg_clamped_prob1_kernel(%arg0: i32, %arg1: i32, %arg2: memref<2x2x128xf32, #tpu.memory_space<vmem>>, %arg3: memref<2x128xf32, #tpu.memory_space<vmem>>) attributes {dimension_semantics = [#tpu.dimension_semantics<parallel>, #tpu.dimension_semantics<parallel>], iteration_bounds = array<i64: 1, 2>, scalar_prefetch = 0 : i64, scratch_operands = 0 : i64, tpu.core_type = #tpu.core_type<tc>, window_params = [{transform_indices = @transform_0, window_bounds = array<i64: 2, 2, 128>}, {transform_indices = @transform_1, window_bounds = array<i64: 2, 128>}]} {
    %c0 = arith.constant 0 : index
    %c0_0 = arith.constant 0 : index
    %c0_1 = arith.constant 0 : index
    %0 = vector.load %arg2[%c0, %c0_0, %c0_1] : memref<2x2x128xf32, #tpu.memory_space<vmem>>, vector<2x2x128xf32>
    %1 = vector.extract_strided_slice %0 {offsets = [0, 1, 0], sizes = [2, 1, 128], strides = [1, 1, 1]} : vector<2x2x128xf32> to vector<2x1x128xf32>
    %2 = vector.shape_cast %1 : vector<2x1x128xf32> to vector<2x128xf32>
    %3 = vector.extract_strided_slice %0 {offsets = [0, 0, 0], sizes = [2, 1, 128], strides = [1, 1, 1]} : vector<2x2x128xf32> to vector<2x1x128xf32>
    %4 = vector.shape_cast %3 : vector<2x1x128xf32> to vector<2x128xf32>
    %5 = arith.subf %2, %4 : vector<2x128xf32>
    %cst = arith.constant 0.000000e+00 : f32
    %6 = vector.broadcast %cst : f32 to vector<2x128xf32>
    %7 = arith.subf %6, %5 : vector<2x128xf32>
    %8 = math.exp %7 : vector<2x128xf32>
    %cst_2 = arith.constant 1.000000e+00 : f32
    %9 = vector.broadcast %cst_2 : f32 to vector<2x128xf32>
    %10 = arith.addf %9, %8 : vector<2x128xf32>
    %11 = tpu.reciprocal %10 : vector<2x128xf32> -> vector<2x128xf32>
    %cst_3 = arith.constant 1.000000e-07 : f32
    %cst_4 = arith.constant 0.99999988 : f32
    %12 = vector.broadcast %cst_3 : f32 to vector<2x128xf32>
    %13 = arith.maximumf %12, %11 : vector<2x128xf32>
    %14 = vector.broadcast %cst_4 : f32 to vector<2x128xf32>
    %15 = arith.minimumf %14, %13 : vector<2x128xf32>
    %cst_5 = arith.constant 0.000000e+00 : f32
    %16 = vector.broadcast %cst_5 : f32 to vector<2x128xf32>
    %17 = arith.subf %16, %15 : vector<2x128xf32>
    %c0_6 = arith.constant 0 : index
    %c0_7 = arith.constant 0 : index
    %18 = vector.load %arg3[%c0_6, %c0_7] : memref<2x128xf32, #tpu.memory_space<vmem>>, vector<2x128xf32>
    tpu.vector_store %arg3[%c0_6, %c0_7], %17 {strides = array<i32>} : memref<2x128xf32, #tpu.memory_space<vmem>>, vector<2x128xf32>,
    return
  }
  func.func @transform_0(%arg0: i32, %arg1: i32) -> (i32, i32, i32) {
    %c0_i32 = arith.constant 0 : i32
    %c0_i32_0 = arith.constant 0 : i32
    return %arg0, %c0_i32, %arg1 : i32, i32, i32
  }
  func.func @transform_1(%arg0: i32, %arg1: i32) -> (i32, i32) {
    %c0_i32 = arith.constant 0 : i32
    return %arg0, %arg1 : i32, i32
  }
}

</mosaic_0001>

<bundles_post_ra>
// kernel: tpu_custom_call.1
= control target key start
LH: loop header
LB: loop body
LE: loop exit
PB: predicated region body
PF: predicated region fallthrough
CT: control target
= control target key end

     0   :  { %6 = vsyncpa [#allocation3], 0  ;;  %s672_s0 = inlined_call_operand.hbm [shape: f32[20,2,256], index: 0, kind: input, shape index: {}]   ;;  %s673_s1 = inlined_call_operand.hbm [shape: f32[2,256], index: 1, kind: output, shape index: {}]  }
   0x1   :  { %8 = vsyncpa [#allocation3 + $0x1], 0 }
   0x2   :  { %9 = vsyncpa [#allocation4], 0 }
   0x3   :  { %11 = vsyncpa [#allocation4 + $0x1], 0  ;;  %s500_s6 = smov 0   ;;  %s502_s7 = smov 0  }
   0x4   :  { %s504_s8 = smov 0   ;;  %s506_s9 = smov 0  }
   0x5   :  { %s508_s10 = smov 0   ;;  %s510_s11 = smov 0  }
   0x6 LB: > { %s285_s12 = sadd.s32 4294967295, %s483_s11   ;;  %s286_s13 = sadd.s32 4294967294, %s483_s11   ;;  %s483_s11 = sphi %s510_s11, %s17_s11   ;;  %s479_s10 = sphi %s508_s10, %s687_s10   ;;  %s475_s9 = sphi %s506_s9, %s686_s9   ;;  %s471_s8 = sphi %s504_s8, %s685_s8   ;;  %s467_s7 = sphi %s502_s7, %s684_s7   ;;  %s463_s6 = sphi %s500_s6, %s683_s6  }
   0x7   : > { %s26_s14 = sadd.s32 1, %s479_s10  ;;  %s38_s15 = sadd.s32 1, %s471_s8 }
   0x8   : > { %p27_p0 = scmp.ge.s32.totalorder %s26_s14, 2  ;;  %p45_p1 = scmp.ne.s32.totalorder %s471_s8, %s467_s7 }
   0x9   : > { %p46_p2 = scmp.eq.s32.totalorder %s483_s11, 0  ;;  %p51_p3 = scmp.ne.s32.totalorder %s467_s7, %s463_s6 }
   0xa   : > { %s689_s14 = smov (%p27_p0, %s26_s14), 0  ;;  %p52_p5 = scmp.eq.s32.totalorder %s285_s12, 0 }
   0xb   : > { %p541_p4 = por %p46_p2, %p45_p1  ;;  %s34_s17 = ssub.s32 %s479_s10, %s689_s14 }
   0xc   : > { %p77_p6 = scmp.eq.s32.totalorder %s285_s12, 1  ;;  %p36_p7 = scmp.eq.s32.totalorder %s34_s17, 0 }
   0xd   : > { %p547_p8 = por %p52_p5, %p51_p3  ;;  %p83_p10 = scmp.eq.s32.totalorder %s286_s13, 1 }
   0xe   : > { %p551_p9 = por %p77_p6, %p45_p1  ;;  %p310_p13 = scmp.lt.s32.totalorder %s483_s11, 2 }
   0xf   : > { %s556_s20 = scalar_select %p36_p7, %s471_s8, %s38_s15  }
  0x10   : > { %s677_s19 = scalar_select %p551_p9, 1, 0 }
  0x11   : > { %p558_p11 = por %p83_p10, %p51_p3  ;;  %s103_s22 = sand.u32 1, %s471_s8  }
  0x12   : > { %s289_s23 = sshll.u32 %s103_s22, 2  ;;  %s290_s24 = sshll.u32 %s479_s10, 5 }
  0x13   : > { %s678_s21 = scalar_select %p558_p11, 1, 0 }
  0x14   : > { %s569_s27 = scalar_lea.hbm %s672_s0, %s290_s24  ;;  %s107_s28 = scalar_lea.vmem [#allocation2], %s289_s23 }
  0x15   : > { %s116_s29 = sshll.u32 %s107_s28, 4  ;;  %p575_p0 = pnand %p310_p13, %p541_p4  ;;  %s571_s29 = int_to_ptr.vmem [resolvable:$true] %s116_s29 }
  0x16   : > { %s579_s2 = scalar_lea.sflag [#allocation3], %s103_s22  ;;  %s371_s3 = scalar_lea.hbm %s569_s27, 64 }
  0x17   : > { %p372_p1 = scmp.ne.s32.totalorder %s569_s27, %s371_s3  ;;  %p373_p2 = pneg %p575_p0 }
  0x18   : > { %s376_s12 = scalar_lea.hbm %s672_s0, 1280  ;;  %p377_p4 = scmp.lt.u32.totalorder %s569_s27, %s672_s0 }
  0x19   : > { %p374_p3 = pnand %p373_p2, %p372_p1  ;;  %p378_p6 = scmp.lt.u32.totalorder %s376_s12, %s371_s3 }
  0x1a   : > { %p380_p10 = scmp.lt.u32.totalorder %s371_s3, %s569_s27 }
  0x1b   : > { %p375_p5 = pneg %p374_p3  ;;  %p379_p7 = por %p378_p6, %p377_p4 }
  0x1d   : > { %p381_p13 = por %p380_p10, %p379_p7 }
  0x1f   : > { %p382_p12 = pnand %p381_p13, %p375_p5 }
  0x21   : > { %385 = shalt.err (!%p382_p12)
}
  0x22   : > { %s386_s16 = scalar_lea.vmem %s571_s29, 64  ;;  %s485_s17 = smov [#allocation2]  }
  0x23   : > { %p387_p1 = scmp.ne.s32.totalorder %s571_s29, %s386_s16  ;;  %s391_s22 = sshll.u32 %s485_s17, 4  ;;  %s392_s22 = int_to_ptr.vmem [resolvable:$false] %s391_s22 }
  0x24   : > { %s393_s23 = scalar_lea.vmem %s392_s22, 128  ;;  %p394_p9 = scmp.lt.s32.totalorder %s571_s29, %s392_s22 }
  0x25   : > { %p389_p3 = pnand %p387_p1, %p373_p2  ;;  %p395_p4 = scmp.lt.s32.totalorder %s393_s23, %s386_s16 }
  0x27   : > { %p390_p11 = pneg %p389_p3  ;;  %p396_p6 = por %p395_p4, %p394_p9 }
  0x29   : > { %p397_p7 = pnand %p396_p6, %p390_p11 }
  0x2b   : > { %400 = shalt.err (!%p397_p7)
}
  0x2c   : > { %s486_s24 = smov 64   ;;  %s487_s25 = smov 32  }
  0x2d   : > { %s488_s26 = smov 2   ;;  %p291_p12 = scmp.ge.s32.totalorder %s483_s11, 1 }
  0x2e   : > { %305 = dma.hbm_to_vmem [thread:$0]  (!%p575_p0), %s569_s27, 64, %s571_s29, %s579_s2, %s486_s24, %s487_s25, %s488_s26  }
  0x2f   : > { %p124_p2 = scmp.lt.s32.totalorder %s483_s11, 3 }
  0x31   : > { %p125_p5 = pnand %p291_p12, %p124_p2 }
  0x32   : > { %s610_s28 = sand.u32 (!%p125_p5), 1, %s467_s7  }
  0x33   : > { %128 = sbr.rel (%p125_p5) target bundleno = 116 (0x74), region = 24  ;;  %s292_s3 = sshll.u32 (!%p125_p5), %s610_s28, 2 }
  0x34   : > { %s131_s4 = scalar_lea.sflag (!%p125_p5), [#allocation3], %s610_s28  ;;  %s134_s5 = scalar_lea.vmem (!%p125_p5), [#allocation2], %s292_s3 }
  0x3a   : > { %454 = dma.done.wait (%p547_p8), %s131_s4, 64  }
  0x3b   : > { %456 = vsyncadd (%p547_p8), %s131_s4, 4294967232  ;;  %v154_v0 = vld [vmem:[%s134_s5] sm:$0x3]  ;;  %v155_v1 = vld [vmem:[%s134_s5 + $0x2] sm:$0x3]  ;;  %s293_s18 = sshll.u32 %s610_s28, 1 }
  0x3c   : > { %v158_v2 = vrot.slane %v154_v0, 7  ;;  %v159_v3 = vrot.slane %v155_v1, 7  ;;  %s152_s27 = scalar_lea.vmem [#allocation5], %s293_s18  ;;  %s295_s30 = sshll.u32 %s475_s9, 5  ;;  %vm183_vm0 = vcmask 1042434  }
  0x3d   : > { %s203_s29 = sshll.u32 %s152_s27, 4  ;;  %s625_s13 = scalar_lea.hbm %s673_s1, %s295_s30  ;;  %s620_s29 = int_to_ptr.vmem [resolvable:$true] %s203_s29 }
  0x3e   : > { %v162_v4 = vsub.f32 %v154_v0, %v158_v2  ;;  %v163_v5 = vsub.f32 %v155_v1, %v159_v3  ;;  %s188_s15 = scalar_lea.sflag [#allocation4], %s610_s28  ;;  %s401_s16 = scalar_lea.vmem %s620_s29, 32 }
  0x3f   : > { %p402_p8 = scmp.ne.s32.totalorder %s620_s29, %s401_s16  ;;  %p680_p9 = scmp.ne.s32.totalorder %s677_s19, 0 }
  0x40   : > { %v164_v6 = vsub.f32 0.0, %v162_v4  ;;  %v165_v7 = vsub.f32 0.0, %v163_v5  ;;  %s489_s9 = smov [#allocation5]  }
  0x41   : > { %p403_p11 = pnand %p402_p8, %p680_p9  ;;  %s405_s17 = sshll.u32 %s489_s9, 4  ;;  %s406_s17 = int_to_ptr.vmem [resolvable:$false] %s405_s17 }
  0x42   : > { %v166_v8 = vmul.f32 1.442695, %v164_v6  ;;  %v168_v9 = vmul.f32 1.442695, %v165_v7  ;;  %s407_s22 = scalar_lea.vmem %s406_s17, 64  ;;  %p408_p10 = scmp.lt.s32.totalorder %s620_s29, %s406_s17 }
  0x43   : > { %p404_p0 = pneg %p403_p11  ;;  %p409_p13 = scmp.lt.s32.totalorder %s407_s22, %s401_s16 }
  0x44   : > { %363 = vpow2.f32 %v166_v8 }
  0x45   : > { %365 = vpow2.f32 %v168_v9  ;;  %p410_p1 = por %p409_p13, %p408_p10 }
  0x47   : > { %p411_p3 = pnand %p410_p1, %p404_p0 }
  0x4e   : > { %v364_v10 = vpop.eup %363 }
  0x4f   : > { %v366_v11 = vpop.eup %365  ;;  %v170_v12 = vadd.f32 1.0, %v364_v10 }
  0x50   : > { %v171_v13 = vadd.f32 1.0, %v366_v11 }
  0x51   : > { %367 = vrcp.f32 %v170_v12 }
  0x52   : > { %369 = vrcp.f32 %v171_v13 }
  0x5b   : > { %v368_v14 = vpop.eup %367 }
  0x5c   : > { %v370_v15 = vpop.eup %369  ;;  %v174_v16 = vmax.f32 %v368_v14, 1e-07 }
  0x5d   : > { %v175_v17 = vmax.f32 %v370_v15, 1e-07 }
  0x5e   : > { %v176_v18 = vmin.f32 %v174_v16, 0.9999999 }
  0x5f   : > { %v177_v19 = vmin.f32 %v175_v17, 0.9999999 }
  0x60   : > { %v178_v20 = vsub.f32 0.0, %v176_v18 }
  0x61   : > { %v179_v21 = vsub.f32 0.0, %v177_v19 }
  0x63   : > { %v182_v22 = vrot.slane %v179_v21, 7 }
  0x65   : > { %v184_v23 = vsel %vm183_vm0, %v182_v22, %v178_v20 }
  0x66   : > { %186 = vst [vmem:[%s152_s27 - $0x1] sm:$0x6] %v184_v23 }
  0x67   : > { %414 = shalt.err (!%p411_p3)
}
  0x68   : > { %s415_s23 = scalar_lea.hbm %s625_s13, 32  ;;  %s419_s26 = scalar_lea.hbm %s673_s1, 64 }
  0x69   : > { %p416_p4 = scmp.ne.s32.totalorder %s625_s13, %s415_s23  ;;  %p420_p12 = scmp.lt.u32.totalorder %s625_s13, %s673_s1 }
  0x6a   : > { %p421_p2 = scmp.lt.u32.totalorder %s419_s26, %s415_s23  ;;  %p423_p8 = scmp.lt.u32.totalorder %s415_s23, %s625_s13 }
  0x6b   : > { %p417_p6 = pnand %p416_p4, %p680_p9 }
  0x6c   : > { %p422_p5 = por %p421_p2, %p420_p12 }
  0x6d   : > { %p418_p7 = pneg %p417_p6 }
  0x6e   : > { %p424_p11 = por %p423_p8, %p422_p5 }
  0x70   : > { %p425_p0 = pnand %p424_p11, %p418_p7 }
  0x72   : > { %428 = shalt.err (!%p425_p0)
}
  0x73   : > { %300 = dma.vmem_to_hbm [thread:$0]  (%p680_p9), %s620_s29, 32, %s625_s13, %s188_s15  }
  0x74 PF: > { %s215_s4 = sand.u32 1, %s463_s6   ;;  %p681_p10 = scmp.ne.s32.totalorder %s678_s21, 0 }
  0x75   : > { %p682_p13 = scmp.ge.s32.totalorder %s483_s11, 2  ;;  %s216_s5 = scalar_lea.sflag [#allocation4], %s215_s4 }
  0x77   : > { %p307_p1 = pnand %p682_p13, %p681_p10 }
  0x79   : > { %458 = dma.done.wait (!%p307_p1), %s216_s5, 32  }
  0x7a   : > { %460 = vsyncadd (!%p307_p1), %s216_s5, 4294967264  ;;  %s17_s11 = sadd.s32 1, %s483_s11   ;;  %s683_s6 = smov %s467_s7 }
  0x7b   : > { %p14_p3 = scmp.ge.s32.totalorder %s17_s11, 4   ;;  %s684_s7 = smov %s471_s8 }
  0x7c   : > { %s685_s8 = smov %s556_s20  ;;  %s686_s9 = smov %s479_s10 }
  0x7d   : > { %s687_s10 = smov %s689_s14  ;;  %16 = sbr.rel (!%p14_p3) target bundleno = 6 (0x6), region = 69 }
  0x84   :  { %221 = vsyncpa [#allocation3], 1 }
  0x85   :  { %223 = vsyncpa [#allocation3 + $0x1], 1 }
  0x86   :  { %224 = vsyncpa [#allocation4], 1 }
  0x87   :  { %226 = vsyncpa [#allocation4 + $0x1], 1 }

</bundles_post_ra>
